<compile_context>
chip_gen: v7x
topology: tpu7x:2x2x1
jax: 0.10.0
libtpu: 0.0.40
codegen_flags: <defaults>
</compile_context>

<pallas_src>
import functools

import jax
import jax.numpy as jnp
from jax.experimental import pallas as pl
from jax.experimental.pallas import tpu as pltpu

HIDDEN = 512  # fixed by the module definition (fc1: input_dim -> 512)

_SUBLANE_PACK = {4: 8, 2: 16, 1: 32}  # itemsize -> sublane packing


def _round_up(x: int, m: int) -> int:
    return ((x + m - 1) // m) * m


def _ceil_div(a: int, b: int) -> int:
    return -(-a // b)


def _vmem_capacity_bytes() -> int:
    """Physical per-TensorCore VMEM; conservative 64 MiB (v7x) fallback."""
    get_info = getattr(pltpu, "get_tpu_info", None)
    if get_info is not None:
        try:
            return int(get_info().vmem_capacity_bytes)
        except Exception:
            pass
    return 64 << 20


def _regressor_head_kernel(x_ref, w1_ref, b1_ref, w2_ref, b2_ref, o_ref, h_acc):
    # x_ref : (block_b, block_k)        VMEM  (tile of the input)
    # w1_ref: (block_k, 512)            VMEM  (K-slice of W1)
    # b1_ref: (1, 512)                  VMEM  (single-buffered)
    # w2_ref: (512, block_n)            VMEM  (N-slice of W2)
    # b2_ref: (1, block_n)              VMEM
    # o_ref : (block_b, block_n)        VMEM
    # h_acc : (block_b, 512) f32        scratch accumulator for fc1
    k = pl.program_id(2)

    @pl.when(k == 0)
    def _():
        h_acc[...] = jnp.zeros_like(h_acc)

    # Partial fc1: accumulate x_tile @ W1_ktile on the MXU in f32.
    h_acc[...] += jnp.dot(x_ref[...], w1_ref[...],
                          preferred_element_type=jnp.float32)

    @pl.when(k == pl.num_programs(2) - 1)
    def _():
        # bias + ReLU (dropout is identity in eval mode), then fc2 N-slice.
        h = jnp.maximum(h_acc[...] + b1_ref[...].astype(jnp.float32), 0.0)
        out = jnp.dot(h.astype(w2_ref.dtype), w2_ref[...],
                      preferred_element_type=jnp.float32)
        out = out + b2_ref[...].astype(jnp.float32)
        o_ref[...] = out.astype(o_ref.dtype)


@functools.partial(jax.jit, static_argnames=("block_b", "block_k", "block_n"))
def regressor_head(x, w1, b1, w2, b2, *, block_b=None, block_k=None, block_n=None):
    """x: (B, input_dim); w1: (input_dim, 512); b1: (512,);
    w2: (512, output_dim); b2: (output_dim,).  Returns (B, output_dim)."""
    B, input_dim = x.shape
    output_dim = w2.shape[1]
    pack = _SUBLANE_PACK.get(jnp.dtype(x.dtype).itemsize, 8)

    # ---- chip-aware tile caps (all static) -----------------------------------
    vmem_cap = _vmem_capacity_bytes()
    if vmem_cap >= (100 << 20):        # v5e / v6e: 128 MiB VMEM per TC
        bb_cap, bk_cap = 1024, 4096
    else:                              # v7x: 64 MiB per TC -> smaller slices
        bb_cap, bk_cap = 512, 2048
    bn_cap = 2048

    # Batch tiling: divide B with minimal padding; >=2 tiles when B is big
    # enough so both TensorCores get a batch tile on megacore / v7x.
    if block_b is None:
        n_b = max(1, _ceil_div(B, bb_cap))
        if B >= 2 * pack:
            n_b = max(n_b, 2)
        block_b = _round_up(_ceil_div(B, n_b), pack)
    else:
        block_b = max(pack, _round_up(block_b, pack))
    b_pad = _round_up(B, block_b)
    b_tiles = b_pad // block_b

    # K (reduction) tiling: lane-aligned, even split.
    k_align = _round_up(input_dim, 128)
    if block_k is None:
        n_k = max(1, _ceil_div(k_align, bk_cap))
    else:
        n_k = max(1, _ceil_div(k_align, max(128, _round_up(block_k, 128))))
    block_k = _round_up(_ceil_div(k_align, n_k), 128)
    k_pad = block_k * n_k

    # N (output) tiling: lane-dense stores, even split.
    n_align = max(128, _round_up(output_dim, 128))
    if block_n is None:
        n_n = max(1, _ceil_div(n_align, bn_cap))
    else:
        n_n = max(1, _ceil_div(n_align, max(128, _round_up(block_n, 128))))
    block_n = _round_up(_ceil_div(n_align, n_n), 128)
    n_pad = block_n * n_n

    # ---- conditional padding (only pay HBM traffic when actually needed) -----
    # (Ideally weights would be padded once at model-init time; here we at
    #  least skip the copies entirely for aligned shapes.)
    need_k_pad = k_pad != input_dim
    need_n_pad = n_pad != output_dim
    need_b_pad = b_pad != B

    if need_k_pad:
        x_p = jnp.zeros((b_pad, k_pad), x.dtype).at[:B, :input_dim].set(x)
        w1_p = jnp.zeros((k_pad, HIDDEN), w1.dtype).at[:input_dim, :].set(w1)
    else:
        x_p = jnp.pad(x, ((0, b_pad - B), (0, 0))) if need_b_pad else x
        w1_p = w1
    b1_p = b1.reshape(1, HIDDEN)
    if need_n_pad:
        w2_p = jnp.zeros((HIDDEN, n_pad), w2.dtype).at[:, :output_dim].set(w2)
        b2_p = jnp.zeros((1, n_pad), b2.dtype).at[:, :output_dim].set(
            b2.reshape(1, -1))
    else:
        w2_p = w2
        b2_p = b2.reshape(1, n_pad)

    # ---- BlockSpecs (single-buffer anything with a constant block index) -----
    if n_k == 1:
        w1_spec = pl.BlockSpec((block_k, HIDDEN), lambda i, j, k: (0, 0),
                               pipeline_mode=pl.Buffered(1))
    else:
        w1_spec = pl.BlockSpec((block_k, HIDDEN), lambda i, j, k: (k, 0))
    if n_n == 1:
        w2_spec = pl.BlockSpec((HIDDEN, block_n), lambda i, j, k: (0, 0),
                               pipeline_mode=pl.Buffered(1))
        b2_spec = pl.BlockSpec((1, block_n), lambda i, j, k: (0, 0),
                               pipeline_mode=pl.Buffered(1))
    else:
        w2_spec = pl.BlockSpec((HIDDEN, block_n), lambda i, j, k: (0, j))
        b2_spec = pl.BlockSpec((1, block_n), lambda i, j, k: (0, j))

    # ---- VMEM budget (clamped to the physical per-TC capacity) ---------------
    isz = jnp.dtype(x.dtype).itemsize
    w1_bufs = 1 if n_k == 1 else 2
    w2_bufs = 1 if n_n == 1 else 2
    vmem_bytes = (
        2 * block_b * block_k * isz                              # x tiles
        + w1_bufs * block_k * HIDDEN * jnp.dtype(w1.dtype).itemsize
        + HIDDEN * jnp.dtype(b1.dtype).itemsize                  # b1
        + w2_bufs * HIDDEN * block_n * jnp.dtype(w2.dtype).itemsize
        + w2_bufs * block_n * jnp.dtype(b2.dtype).itemsize
        + 2 * block_b * block_n * isz                            # out tiles
        + block_b * HIDDEN * 4                                   # f32 h_acc
    )
    vmem_limit = int(min(max(int(vmem_bytes * 1.4) + (4 << 20), 32 << 20),
                         vmem_cap - (4 << 20)))

    # ---- cost estimate (accounts for W1/W2 re-streaming across tiles) --------
    cost = pl.CostEstimate(
        flops=2 * b_pad * k_pad * HIDDEN * n_n + 2 * b_pad * HIDDEN * n_pad,
        transcendentals=0,
        bytes_accessed=(
            b_pad * k_pad * isz * n_n
            + k_pad * HIDDEN * jnp.dtype(w1.dtype).itemsize * b_tiles * n_n
            + HIDDEN * n_pad * jnp.dtype(w2.dtype).itemsize * b_tiles
            + b_pad * n_pad * isz),
    )

    out_p = pl.pallas_call(
        _regressor_head_kernel,
        out_shape=jax.ShapeDtypeStruct((b_pad, n_pad), x.dtype),
        grid_spec=pltpu.PrefetchScalarGridSpec(
            num_scalar_prefetch=0,
            grid=(b_tiles, n_n, n_k),
            in_specs=[
                pl.BlockSpec((block_b, block_k), lambda i, j, k: (i, k)),
                w1_spec,
                pl.BlockSpec((1, HIDDEN), lambda i, j, k: (0, 0),
                             pipeline_mode=pl.Buffered(1)),
                w2_spec,
                b2_spec,
            ],
            out_specs=pl.BlockSpec((block_b, block_n), lambda i, j, k: (i, j)),
            scratch_shapes=[pltpu.VMEM((block_b, HIDDEN), jnp.float32)],
        ),
        compiler_params=pltpu.CompilerParams(
            dimension_semantics=("parallel", "parallel", "arbitrary"),
            vmem_limit_bytes=vmem_limit,
        ),
        cost_estimate=cost,
    )(x_p, w1_p, b1_p, w2_p, b2_p)

    if need_b_pad or need_n_pad:
        out_p = out_p[:B, :output_dim]
    return out_p


def _reference(x, w1, b1, w2, b2):
    h = jnp.maximum(x @ w1 + b1, 0.0)
    return h @ w2 + b2


def _make_params(key, input_dim, output_dim):
    k_w1, k_b1, k_w2, k_b2 = jax.random.split(key, 4)
    bound1 = 1.0 / jnp.sqrt(jnp.float32(input_dim))
    w1 = jax.random.uniform(k_w1, (input_dim, HIDDEN), jnp.float32, -bound1, bound1)
    b1 = jax.random.uniform(k_b1, (HIDDEN,), jnp.float32, -bound1, bound1)
    bound2 = 1.0 / jnp.sqrt(jnp.float32(HIDDEN))
    w2 = jax.random.uniform(k_w2, (HIDDEN, output_dim), jnp.float32, -bound2, bound2)
    b2 = jax.random.uniform(k_b2, (output_dim,), jnp.float32, -bound2, bound2)
    return w1, b1, w2, b2


if __name__ == "__main__":
    key = jax.random.PRNGKey(0)
    k_a, k_b, k_c, k_pa, k_pb, k_pc = jax.random.split(key, 6)

    # Case 1: basic small shape (B=8, input_dim=32, output_dim=16).
    B, input_dim, output_dim = 8, 32, 16
    x = jax.random.normal(k_a, (B, input_dim), dtype=jnp.float32)
    w1, b1, w2, b2 = _make_params(k_pa, input_dim, output_dim)
    out = jax.block_until_ready(regressor_head(x, w1, b1, w2, b2))
    ref = _reference(x, w1, b1, w2, b2)
    assert out.shape == (B, output_dim)
    assert jnp.allclose(out, ref, atol=1e-4, rtol=1e-4), "case1 mismatch"

    # Case 2: ragged batch + multi-step K reduction (padding + accumulator).
    B2, in2, out2 = 10, 160, 3
    x2 = jax.random.normal(k_b, (B2, in2), dtype=jnp.float32)
    w1b, b1b, w2b, b2b = _make_params(k_pb, in2, out2)
    out_2 = jax.block_until_ready(
        regressor_head(x2, w1b, b1b, w2b, b2b, block_b=8, block_k=128))
    ref_2 = _reference(x2, w1b, b1b, w2b, b2b)
    assert out_2.shape == (B2, out2)
    assert jnp.allclose(out_2, ref_2, atol=1e-4, rtol=1e-4), "case2 mismatch"

    # Case 3: multi-tile batch + N-tiled fc2 epilogue (exercises the 3-D grid).
    B3, in3, out3 = 24, 256, 300
    x3 = jax.random.normal(k_c, (B3, in3), dtype=jnp.float32)
    w1c, b1c, w2c, b2c = _make_params(k_pc, in3, out3)
    out_3 = jax.block_until_ready(
        regressor_head(x3, w1c, b1c, w2c, b2c, block_n=128))
    ref_3 = _reference(x3, w1c, b1c, w2c, b2c)
    assert out_3.shape == (B3, out3)
    assert jnp.allclose(out_3, ref_3, atol=1e-4, rtol=1e-4), "case3 mismatch"

    print("KERNEL_OK")
</pallas_src>

<mosaic_0001>
module attributes {stable_mosaic.version = 11 : i64} {
  func.func @_regressor_head_kernel(%arg0: i32, %arg1: i32, %arg2: i32, %arg3: memref<8x128xf32, #tpu.memory_space<vmem>>, %arg4: memref<128x512xf32, #tpu.memory_space<vmem>>, %arg5: memref<1x512xf32, #tpu.memory_space<vmem>>, %arg6: memref<512x128xf32, #tpu.memory_space<vmem>>, %arg7: memref<1x128xf32, #tpu.memory_space<vmem>>, %arg8: memref<8x128xf32, #tpu.memory_space<vmem>>, %arg9: memref<8x512xf32, #tpu.memory_space<vmem>>) attributes {dimension_semantics = [#tpu.dimension_semantics<parallel>, #tpu.dimension_semantics<parallel>, #tpu.dimension_semantics<arbitrary>], iteration_bounds = array<i64: 1, 1, 1>, scalar_prefetch = 0 : i64, scratch_operands = 1 : i64, tpu.core_type = #tpu.core_type<tc>, window_params = [{transform_indices = @transform_0, window_bounds = array<i64: 8, 128>}, {pipeline_mode = #tpu.pipeline_mode<synchronous>, transform_indices = @transform_1, window_bounds = array<i64: 128, 512>}, {pipeline_mode = #tpu.pipeline_mode<synchronous>, transform_indices = @transform_2, window_bounds = array<i64: 1, 512>}, {pipeline_mode = #tpu.pipeline_mode<synchronous>, transform_indices = @transform_3, window_bounds = array<i64: 512, 128>}, {pipeline_mode = #tpu.pipeline_mode<synchronous>, transform_indices = @transform_4, window_bounds = array<i64: 1, 128>}, {transform_indices = @transform_5, window_bounds = array<i64: 8, 128>}]} {
    %c0_i32 = arith.constant 0 : i32
    %0 = arith.cmpi eq, %arg2, %c0_i32 : i32
    %1 = arith.extui %0 : i1 to i32
    %c0_i32_0 = arith.constant 0 : i32
    %2 = arith.cmpi ne, %1, %c0_i32_0 : i32
    scf.if %2 {
      %cst_10 = arith.constant 0.000000e+00 : f32
      %12 = vector.broadcast %cst_10 : f32 to vector<8x512xf32>
      %c0_11 = arith.constant 0 : index
      %c0_12 = arith.constant 0 : index
      %13 = vector.load %arg9[%c0_11, %c0_12] : memref<8x512xf32, #tpu.memory_space<vmem>>, vector<8x512xf32>
      tpu.vector_store %arg9[%c0_11, %c0_12], %12 {strides = array<i32>} : memref<8x512xf32, #tpu.memory_space<vmem>>, vector<8x512xf32>,
    } else {
    }
    %c0 = arith.constant 0 : index
    %c0_1 = arith.constant 0 : index
    %3 = vector.load %arg9[%c0, %c0_1] : memref<8x512xf32, #tpu.memory_space<vmem>>, vector<8x512xf32>
    %c0_2 = arith.constant 0 : index
    %c0_3 = arith.constant 0 : index
    %4 = vector.load %arg3[%c0_2, %c0_3] : memref<8x128xf32, #tpu.memory_space<vmem>>, vector<8x128xf32>
    %c0_4 = arith.constant 0 : index
    %c0_5 = arith.constant 0 : index
    %5 = vector.load %arg4[%c0_4, %c0_5] : memref<128x512xf32, #tpu.memory_space<vmem>>, vector<128x512xf32>
    %cst = arith.constant dense<0.000000e+00> : vector<8x512xf32>
    %6 = tpu.matmul %4, %5, %cst {dimension_numbers = #tpu.dot_dimension_numbers<[1], [0], [0], [1], [0, 0, 1, 1], [], []>} : vector<8x128xf32>, vector<128x512xf32>, vector<8x512xf32> -> vector<8x512xf32>
    %7 = arith.addf %3, %6 : vector<8x512xf32>
    %c0_6 = arith.constant 0 : index
    %c0_7 = arith.constant 0 : index
    %8 = vector.load %arg9[%c0_6, %c0_7] : memref<8x512xf32, #tpu.memory_space<vmem>>, vector<8x512xf32>
    tpu.vector_store %arg9[%c0_6, %c0_7], %7 {strides = array<i32>} : memref<8x512xf32, #tpu.memory_space<vmem>>, vector<8x512xf32>,
    %c0_i32_8 = arith.constant 0 : i32
    %9 = arith.cmpi eq, %arg2, %c0_i32_8 : i32
    %10 = arith.extui %9 : i1 to i32
    %c0_i32_9 = arith.constant 0 : i32
    %11 = arith.cmpi ne, %10, %c0_i32_9 : i32
    scf.if %11 {
      %c0_10 = arith.constant 0 : index
      %c0_11 = arith.constant 0 : index
      %12 = vector.load %arg9[%c0_10, %c0_11] : memref<8x512xf32, #tpu.memory_space<vmem>>, vector<8x512xf32>
      %c0_12 = arith.constant 0 : index
      %c0_13 = arith.constant 0 : index
      %13 = vector.load %arg5[%c0_12, %c0_13] : memref<1x512xf32, #tpu.memory_space<vmem>>, vector<1x512xf32>
      %14 = vector.broadcast %13 : vector<1x512xf32> to vector<8x512xf32>
      %15 = arith.addf %12, %14 : vector<8x512xf32>
      %cst_14 = arith.constant 0.000000e+00 : f32
      %16 = vector.broadcast %cst_14 : f32 to vector<8x512xf32>
      %17 = arith.maximumf %15, %16 : vector<8x512xf32>
      %c0_15 = arith.constant 0 : index
      %c0_16 = arith.constant 0 : index
      %18 = vector.load %arg6[%c0_15, %c0_16] : memref<512x128xf32, #tpu.memory_space<vmem>>, vector<512x128xf32>
      %cst_17 = arith.constant dense<0.000000e+00> : vector<8x128xf32>
      %19 = tpu.matmul %17, %18, %cst_17 {dimension_numbers = #tpu.dot_dimension_numbers<[1], [0], [0], [1], [0, 0, 1, 1], [], []>} : vector<8x512xf32>, vector<512x128xf32>, vector<8x128xf32> -> vector<8x128xf32>
      %c0_18 = arith.constant 0 : index
      %c0_19 = arith.constant 0 : index
      %20 = vector.load %arg7[%c0_18, %c0_19] : memref<1x128xf32, #tpu.memory_space<vmem>>, vector<1x128xf32>
      %21 = vector.broadcast %20 : vector<1x128xf32> to vector<8x128xf32>
      %22 = arith.addf %19, %21 : vector<8x128xf32>
      %c0_20 = arith.constant 0 : index
      %c0_21 = arith.constant 0 : index
      %23 = vector.load %arg8[%c0_20, %c0_21] : memref<8x128xf32, #tpu.memory_space<vmem>>, vector<8x128xf32>
      tpu.vector_store %arg8[%c0_20, %c0_21], %22 {strides = array<i32>} : memref<8x128xf32, #tpu.memory_space<vmem>>, vector<8x128xf32>,
    } else {
    }
    return
  }
  func.func @transform_0(%arg0: i32, %arg1: i32, %arg2: i32) -> (i32, i32) {
    %c0_i32 = arith.constant 0 : i32
    return %arg0, %arg2 : i32, i32
  }
  func.func @transform_1(%arg0: i32, %arg1: i32, %arg2: i32) -> (i32, i32) {
    %c0_i32 = arith.constant 0 : i32
    %c0_i32_0 = arith.constant 0 : i32
    %c0_i32_1 = arith.constant 0 : i32
    return %c0_i32, %c0_i32_0 : i32, i32
  }
  func.func @transform_2(%arg0: i32, %arg1: i32, %arg2: i32) -> (i32, i32) {
    %c0_i32 = arith.constant 0 : i32
    %c0_i32_0 = arith.constant 0 : i32
    %c0_i32_1 = arith.constant 0 : i32
    return %c0_i32, %c0_i32_0 : i32, i32
  }
  func.func @transform_3(%arg0: i32, %arg1: i32, %arg2: i32) -> (i32, i32) {
    %c0_i32 = arith.constant 0 : i32
    %c0_i32_0 = arith.constant 0 : i32
    %c0_i32_1 = arith.constant 0 : i32
    return %c0_i32, %c0_i32_0 : i32, i32
  }
  func.func @transform_4(%arg0: i32, %arg1: i32, %arg2: i32) -> (i32, i32) {
    %c0_i32 = arith.constant 0 : i32
    %c0_i32_0 = arith.constant 0 : i32
    %c0_i32_1 = arith.constant 0 : i32
    return %c0_i32, %c0_i32_0 : i32, i32
  }
  func.func @transform_5(%arg0: i32, %arg1: i32, %arg2: i32) -> (i32, i32) {
    %c0_i32 = arith.constant 0 : i32
    return %arg0, %arg1 : i32, i32
  }
}

</mosaic_0001>

<bundles_post_ra>
// kernel: regressor_head.1
= control target key start
LH: loop header
LB: loop body
LE: loop exit
PB: predicated region body
PF: predicated region fallthrough
CT: control target
= control target key end

     0   :  { %v736_v7 = vmov 0.0   ;;  %s1173_s0 = inlined_call_operand.vmem [shape: f32[8,128], index: 0, kind: input, shape index: {}]   ;;  %s1174_s1 = inlined_call_operand.vmem [shape: f32[128,512], index: 1, kind: input, shape index: {}]   ;;  %s1175_s2 = inlined_call_operand.vmem [shape: f32[1,512], index: 2, kind: input, shape index: {}]   ;;  %s1176_s3 = inlined_call_operand.vmem [shape: f32[512,128], index: 3, kind: input, shape index: {}]   ;;  %s1177_s4 = inlined_call_operand.vmem [shape: f32[1,128], index: 4, kind: input, shape index: {}]   ;;  %s1178_s5 = inlined_call_operand.hbm [shape: f32[8,128], index: 5, kind: output, shape index: {}]  }
   0x1   :  { %v35_v0 = vld [vmem:[%s1174_s1 + $0x8] sm:$0xff]  ;;  %v37_v2 = vld [vmem:[%s1174_s1 + $0x18] sm:$0xff]  ;;  %v34_v5 = vld [vmem:[%s1174_s1] sm:$0xff]  ;;  %162 = vmatprep.mubr.f32.mxu0 %v736_v7  ;;  %233 = vmatprep.mubr.f32.mxu1 %v736_v7 }
   0x2   :  { %v39_v1 = vld [vmem:[%s1174_s1 + $0x28] sm:$0xff]  ;;  %v41_v4 = vld [vmem:[%s1174_s1 + $0x38] sm:$0xff]  ;;  %v38_v6 = vld [vmem:[%s1174_s1 + $0x20] sm:$0xff] }
   0x3   :  { %v582_v3 = vpack.c.bf16 %v39_v1, %v35_v0  ;;  %v614_v8 = vpack.c.bf16 %v41_v4, %v37_v2  ;;  %v584_v9 = vpack.c.bf16 %v38_v6, %v34_v5  ;;  %v36_v10 = vld [vmem:[%s1174_s1 + $0x10] sm:$0xff]  ;;  %v43_v12 = vld [vmem:[%s1174_s1 + $0x48] sm:$0xff]  ;;  %v45_v15 = vld [vmem:[%s1174_s1 + $0x58] sm:$0xff] }
   0x4   :  { %v40_v11 = vld [vmem:[%s1174_s1 + $0x30] sm:$0xff]  ;;  %v47_v14 = vld [vmem:[%s1174_s1 + $0x68] sm:$0xff]  ;;  %v49_v16 = vld [vmem:[%s1174_s1 + $0x78] sm:$0xff] }
   0x5   :  { %583 = vmatprep.subr.bf16.mxu0 %v582_v3  ;;  %v616_v13 = vpack.c.bf16 %v40_v11, %v36_v10  ;;  %615 = vmatprep.subr.bf16.mxu1 %v614_v8  ;;  %v586_v17 = vpack.c.bf16 %v47_v14, %v43_v12  ;;  %v618_v18 = vpack.c.bf16 %v49_v16, %v45_v15  ;;  %v42_v19 = vld [vmem:[%s1174_s1 + $0x40] sm:$0xff]  ;;  %v44_v21 = vld [vmem:[%s1174_s1 + $0x50] sm:$0xff]  ;;  %v51_v24 = vld [vmem:[%s1174_s1 + $0x88] sm:$0xff] }
   0x6   :  { %585 = vmatpush1.bf16.msra.mxu0 %v584_v9  ;;  %v46_v20 = vld [vmem:[%s1174_s1 + $0x60] sm:$0xff]  ;;  %v48_v23 = vld [vmem:[%s1174_s1 + $0x70] sm:$0xff]  ;;  %v55_v25 = vld [vmem:[%s1174_s1 + $0xa8] sm:$0xff] }
   0x7   :  { %617 = vmatpush1.bf16.msra.mxu1 %v616_v13  ;;  %v588_v22 = vpack.c.bf16 %v46_v20, %v42_v19  ;;  %587 = vmatprep.subr.bf16.mxu0 %v586_v17  ;;  %v620_v26 = vpack.c.bf16 %v48_v23, %v44_v21  ;;  %v590_v27 = vpack.c.bf16 %v55_v25, %v51_v24  ;;  %v53_v28 = vld [vmem:[%s1174_s1 + $0x98] sm:$0xff]  ;;  %v50_v30 = vld [vmem:[%s1174_s1 + $0x80] sm:$0xff]  ;;  %v52_v33 = vld [vmem:[%s1174_s1 + $0x90] sm:$0xff] }
   0x8   :  { %619 = vmatprep.subr.bf16.mxu1 %v618_v18  ;;  %v57_v29 = vld [vmem:[%s1174_s1 + $0xb8] sm:$0xff]  ;;  %v54_v32 = vld [vmem:[%s1174_s1 + $0xa0] sm:$0xff]  ;;  %v56_v34 = vld [vmem:[%s1174_s1 + $0xb0] sm:$0xff] }
   0x9   :  { %v622_v31 = vpack.c.bf16 %v57_v29, %v53_v28  ;;  %v592_v35 = vpack.c.bf16 %v54_v32, %v50_v30  ;;  %v59_v36 = vld [vmem:[%s1174_s1 + $0xc8] sm:$0xff]  ;;  %v61_v38 = vld [vmem:[%s1174_s1 + $0xd8] sm:$0xff]  ;;  %v624_v39 = vpack.c.bf16 %v56_v34, %v52_v33  ;;  %v58_v42 = vld [vmem:[%s1174_s1 + $0xc0] sm:$0xff] }
   0xa   :  { %589 = vmatpush1.bf16.msra.mxu0 %v588_v22  ;;  %v63_v37 = vld [vmem:[%s1174_s1 + $0xe8] sm:$0xff]  ;;  %v65_v41 = vld [vmem:[%s1174_s1 + $0xf8] sm:$0xff]  ;;  %v62_v43 = vld [vmem:[%s1174_s1 + $0xe0] sm:$0xff] }
   0xb   :  { %621 = vmatpush1.bf16.msra.mxu1 %v620_v26  ;;  %591 = vmatprep.subr.bf16.mxu0 %v590_v27  ;;  %v594_v40 = vpack.c.bf16 %v63_v37, %v59_v36  ;;  %v626_v44 = vpack.c.bf16 %v65_v41, %v61_v38  ;;  %v60_v45 = vld [vmem:[%s1174_s1 + $0xd0] sm:$0xff]  ;;  %v67_v47 = vld [vmem:[%s1174_s1 + $0x108] sm:$0xff]  ;;  %v69_v49 = vld [vmem:[%s1174_s1 + $0x118] sm:$0xff]  ;;  %v596_v51 = vpack.c.bf16 %v62_v43, %v58_v42 }
   0xc   :  { %623 = vmatprep.subr.bf16.mxu1 %v622_v31  ;;  %v64_v46 = vld [vmem:[%s1174_s1 + $0xf0] sm:$0xff]  ;;  %v71_v48 = vld [vmem:[%s1174_s1 + $0x128] sm:$0xff]  ;;  %v73_v50 = vld [vmem:[%s1174_s1 + $0x138] sm:$0xff] }
   0xd   :  { %v628_v52 = vpack.c.bf16 %v64_v46, %v60_v45  ;;  %v598_v53 = vpack.c.bf16 %v71_v48, %v67_v47  ;;  %v66_v54 = vld [vmem:[%s1174_s1 + $0x100] sm:$0xff]  ;;  %v68_v56 = vld [vmem:[%s1174_s1 + $0x110] sm:$0xff]  ;;  %v630_v57 = vpack.c.bf16 %v73_v50, %v69_v49  ;;  %v75_v59 = vld [vmem:[%s1174_s1 + $0x148] sm:$0xff] }
   0xe   :  { %593 = vmatpush1.bf16.msra.mxu0 %v592_v35  ;;  %v70_v55 = vld [vmem:[%s1174_s1 + $0x120] sm:$0xff]  ;;  %v72_v58 = vld [vmem:[%s1174_s1 + $0x130] sm:$0xff]  ;;  %v79_v60 = vld [vmem:[%s1174_s1 + $0x168] sm:$0xff] }
   0xf   :  { %625 = vmatpush1.bf16.msra.mxu1 %v624_v39  ;;  %595 = vmatprep.subr.bf16.mxu0 %v594_v40  ;;  %v77_v61 = vld [vmem:[%s1174_s1 + $0x158] sm:$0xff]  ;;  %v600_v63 = vpack.c.bf16 %v70_v55, %v66_v54  ;;  %v632_v0 = vpack.c.bf16 %v72_v58, %v68_v56  ;;  %v602_v1 = vpack.c.bf16 %v79_v60, %v75_v59  ;;  %v74_v2 = vld [vmem:[%s1174_s1 + $0x140] sm:$0xff]  ;;  %v76_v4 = vld [vmem:[%s1174_s1 + $0x150] sm:$0xff] }
  0x10   :  { %627 = vmatprep.subr.bf16.mxu1 %v626_v44  ;;  %v81_v62 = vld [vmem:[%s1174_s1 + $0x178] sm:$0xff]  ;;  %v78_v3 = vld [vmem:[%s1174_s1 + $0x160] sm:$0xff]  ;;  %v80_v6 = vld [vmem:[%s1174_s1 + $0x170] sm:$0xff] }
  0x11   :  { %v634_v5 = vpack.c.bf16 %v81_v62, %v77_v61  ;;  %v83_v7 = vld [vmem:[%s1174_s1 + $0x188] sm:$0xff]  ;;  %v85_v9 = vld [vmem:[%s1174_s1 + $0x198] sm:$0xff]  ;;  %v604_v11 = vpack.c.bf16 %v78_v3, %v74_v2  ;;  %v636_v12 = vpack.c.bf16 %v80_v6, %v76_v4  ;;  %v82_v14 = vld [vmem:[%s1174_s1 + $0x180] sm:$0xff] }
  0x12   :  { %597 = vmatpush1.bf16.msra.mxu0 %v596_v51  ;;  %v87_v8 = vld [vmem:[%s1174_s1 + $0x1a8] sm:$0xff]  ;;  %v89_v10 = vld [vmem:[%s1174_s1 + $0x1b8] sm:$0xff]  ;;  %v86_v15 = vld [vmem:[%s1174_s1 + $0x1a0] sm:$0xff] }
  0x13   :  { %629 = vmatpush1.bf16.msra.mxu1 %v628_v52  ;;  %599 = vmatprep.subr.bf16.mxu0 %v598_v53  ;;  %v606_v13 = vpack.c.bf16 %v87_v8, %v83_v7  ;;  %v84_v16 = vld [vmem:[%s1174_s1 + $0x190] sm:$0xff]  ;;  %v638_v17 = vpack.c.bf16 %v89_v10, %v85_v9  ;;  %v91_v19 = vld [vmem:[%s1174_s1 + $0x1c8] sm:$0xff]  ;;  %v93_v21 = vld [vmem:[%s1174_s1 + $0x1d8] sm:$0xff]  ;;  %v608_v23 = vpack.c.bf16 %v86_v15, %v82_v14 }
  0x14   :  { %631 = vmatprep.subr.bf16.mxu1 %v630_v57  ;;  %v88_v18 = vld [vmem:[%s1174_s1 + $0x1b0] sm:$0xff]  ;;  %v95_v20 = vld [vmem:[%s1174_s1 + $0x1e8] sm:$0xff]  ;;  %v97_v22 = vld [vmem:[%s1174_s1 + $0x1f8] sm:$0xff] }
  0x15   :  { %v640_v24 = vpack.c.bf16 %v88_v18, %v84_v16  ;;  %v610_v25 = vpack.c.bf16 %v95_v20, %v91_v19  ;;  %v90_v26 = vld [vmem:[%s1174_s1 + $0x1c0] sm:$0xff]  ;;  %v92_v28 = vld [vmem:[%s1174_s1 + $0x1d0] sm:$0xff]  ;;  %v642_v29 = vpack.c.bf16 %v97_v22, %v93_v21  ;;  %v302_v32 = vld [vmem:[%s1176_s3 + $0x88] sm:$0xff] }
  0x16   :  { %601 = vmatpush1.bf16.msra.mxu0 %v600_v63  ;;  %v94_v27 = vld [vmem:[%s1174_s1 + $0x1e0] sm:$0xff]  ;;  %v96_v30 = vld [vmem:[%s1174_s1 + $0x1f0] sm:$0xff]  ;;  %v334_v34 = vld [vmem:[%s1176_s3 + $0x188] sm:$0xff] }
  0x17   :  { %633 = vmatpush1.bf16.msra.mxu1 %v632_v0  ;;  %603 = vmatprep.subr.bf16.mxu0 %v602_v1  ;;  %v301_v31 = vld [vmem:[%s1176_s3 + $0x80] sm:$0xff]  ;;  %v612_v35 = vpack.c.bf16 %v94_v27, %v90_v26  ;;  %v644_v36 = vpack.c.bf16 %v96_v30, %v92_v28  ;;  %v286_v39 = vld [vmem:[%s1176_s3 + $0x8] sm:$0xff]  ;;  %v303_v43 = vld [vmem:[%s1176_s3 + $0x90] sm:$0xff] }
  0x18   :  { %635 = vmatprep.subr.bf16.mxu1 %v634_v5  ;;  %v333_v33 = vld [vmem:[%s1176_s3 + $0x180] sm:$0xff]  ;;  %v646_v37 = vpack.c.bf16 %v302_v32, %v301_v31  ;;  %v318_v42 = vld [vmem:[%s1176_s3 + $0x108] sm:$0xff]  ;;  %v304_v44 = vld [vmem:[%s1176_s3 + $0x98] sm:$0xff] }
  0x19   :  { %v285_v38 = vld [vmem:[%s1176_s3] sm:$0xff]  ;;  %v678_v41 = vpack.c.bf16 %v334_v34, %v333_v33  ;;  %v335_v45 = vld [vmem:[%s1176_s3 + $0x190] sm:$0xff]  ;;  %v336_v46 = vld [vmem:[%s1176_s3 + $0x198] sm:$0xff]  ;;  %v650_v50 = vpack.c.bf16 %v304_v44, %v303_v43 }
  0x1a   :  { %605 = vmatpush1.bf16.msra.mxu0 %v604_v11  ;;  %v317_v40 = vld [vmem:[%s1176_s3 + $0x100] sm:$0xff]  ;;  %v648_v48 = vpack.c.bf16 %v286_v39, %v285_v38  ;;  %v287_v51 = vld [vmem:[%s1176_s3 + $0x10] sm:$0xff]  ;;  %v288_v52 = vld [vmem:[%s1176_s3 + $0x18] sm:$0xff]  ;;  %v682_v54 = vpack.c.bf16 %v336_v46, %v335_v45 }
  0x1b   :  { %637 = vmatpush1.bf16.msra.mxu1 %v636_v12  ;;  %607 = vmatprep.subr.bf16.mxu0 %v606_v13  ;;  %v33_v47 = vld [vmem:[%s1173_s0] sm:$0xff]  ;;  %v680_v49 = vpack.c.bf16 %v318_v42, %v317_v40  ;;  %v319_v53 = vld [vmem:[%s1176_s3 + $0x110] sm:$0xff]  ;;  %v320_v55 = vld [vmem:[%s1176_s3 + $0x118] sm:$0xff]  ;;  %v652_v60 = vpack.c.bf16 %v288_v52, %v287_v51 }
  0x1c   :  { %639 = vmatprep.subr.bf16.mxu1 %v638_v17  ;;  %v305_v56 = vld [vmem:[%s1176_s3 + $0xa0] sm:$0xff]  ;;  %v306_v57 = vld [vmem:[%s1176_s3 + $0xa8] sm:$0xff]  ;;  %v684_v61 = vpack.c.bf16 %v320_v55, %v319_v53  ;;  %v307_v4 = vld [vmem:[%s1176_s3 + $0xb0] sm:$0xff] }
  0x1d   :  { %v337_v58 = vld [vmem:[%s1176_s3 + $0x1a0] sm:$0xff]  ;;  %v338_v59 = vld [vmem:[%s1176_s3 + $0x1a8] sm:$0xff]  ;;  %v654_v62 = vpack.c.bf16 %v306_v57, %v305_v56  ;;  %v308_v5 = vld [vmem:[%s1176_s3 + $0xb8] sm:$0xff] }
  0x1e   :  { %609 = vmatpush1.bf16.msra.mxu0 %v608_v23  ;;  %v289_v63 = vld [vmem:[%s1176_s3 + $0x20] sm:$0xff]  ;;  %v290_v0 = vld [vmem:[%s1176_s3 + $0x28] sm:$0xff]  ;;  %v686_v2 = vpack.c.bf16 %v338_v59, %v337_v58  ;;  %v339_v6 = vld [vmem:[%s1176_s3 + $0x1b0] sm:$0xff] }
  0x1f   :  { %641 = vmatpush1.bf16.msra.mxu1 %v640_v24  ;;  %611 = vmatprep.subr.bf16.mxu0 %v610_v25  ;;  %v321_v1 = vld [vmem:[%s1176_s3 + $0x120] sm:$0xff]  ;;  %v322_v3 = vld [vmem:[%s1176_s3 + $0x128] sm:$0xff]  ;;  %v340_v7 = vld [vmem:[%s1176_s3 + $0x1b8] sm:$0xff] }
  0x20   :  { %643 = vmatprep.subr.bf16.mxu1 %v642_v29 }
  0x22   :  { %613 = vmatpush1.bf16.msra.mxu0 %v612_v35 }
  0x23   :  { %645 = vmatpush1.bf16.msra.mxu1 %v644_v36  ;;  %647 = vmatprep.subr.bf16.mxu0 %v646_v37 }
  0x24   :  { %679 = vmatprep.subr.bf16.mxu1 %v678_v41 }
  0x25   :  { %163 = vmatmul.mubr.f32.vlgmr.msra.gmra.mrb[0].mxu0 %v33_v47 }
  0x26   :  { %234 = vmatmul.mubr.f32.vlgmr.msra.gmra.mrb[0].mxu1 %v33_v47  ;;  %649 = vmatpush3.bf16.msra.mxu0 %v648_v48 }
  0x27   :  { %681 = vmatpush3.bf16.msra.mxu1 %v680_v49  ;;  %651 = vmatprep.subr.bf16.mxu0 %v650_v50 }
  0x28   :  { %683 = vmatprep.subr.bf16.mxu1 %v682_v54 }
  0x29   :  { %10 = vsyncpa [#allocation4], 0  ;;  %v656_v8 = vpack.c.bf16 %v290_v0, %v289_v63  ;;  %v688_v9 = vpack.c.bf16 %v322_v3, %v321_v1  ;;  %v658_v10 = vpack.c.bf16 %v308_v5, %v307_v4  ;;  %v291_v11 = vld [vmem:[%s1176_s3 + $0x30] sm:$0xff]  ;;  %v292_v12 = vld [vmem:[%s1176_s3 + $0x38] sm:$0xff]  ;;  %v690_v14 = vpack.c.bf16 %v340_v7, %v339_v6  ;;  %s737_s19 = smov [#allocation3]  }
  0x2a   :  { %653 = vmatpush3.bf16.msra.mxu0 %v652_v60  ;;  %v323_v13 = vld [vmem:[%s1176_s3 + $0x130] sm:$0xff]  ;;  %v324_v15 = vld [vmem:[%s1176_s3 + $0x138] sm:$0xff]  ;;  %v309_v16 = vld [vmem:[%s1176_s3 + $0xc0] sm:$0xff]  ;;  %v660_v20 = vpack.c.bf16 %v292_v12, %v291_v11  ;;  %s503_s20 = sshll.u32 %s737_s19, 4  ;;  %s504_s20 = int_to_ptr.vmem [resolvable:$true] %s503_s20 }
  0x2b   :  { %685 = vmatpush3.bf16.msra.mxu1 %v684_v61  ;;  %655 = vmatprep.subr.bf16.mxu0 %v654_v62  ;;  %v310_v17 = vld [vmem:[%s1176_s3 + $0xc8] sm:$0xff]  ;;  %v341_v18 = vld [vmem:[%s1176_s3 + $0x1c0] sm:$0xff]  ;;  %v692_v21 = vpack.c.bf16 %v324_v15, %v323_v13  ;;  %v311_v28 = vld [vmem:[%s1176_s3 + $0xd0] sm:$0xff]  ;;  %s712_s21 = scalar_lea.vmem %s504_s20, 128  ;;  %p717_p1 = scmp.lt.s32.totalorder %s504_s20, %s504_s20 }
  0x2c   :  { %687 = vmatprep.subr.bf16.mxu1 %v686_v2  ;;  %v342_v19 = vld [vmem:[%s1176_s3 + $0x1c8] sm:$0xff]  ;;  %v662_v22 = vpack.c.bf16 %v310_v17, %v309_v16  ;;  %v293_v23 = vld [vmem:[%s1176_s3 + $0x40] sm:$0xff]  ;;  %v312_v29 = vld [vmem:[%s1176_s3 + $0xd8] sm:$0xff]  ;;  %v257_v2 = vlaneseq  ;;  %p713_p0 = scmp.ne.s32.totalorder %s504_s20, %s712_s21  ;;  %p718_p2 = scmp.lt.s32.totalorder %s712_s21, %s712_s21 }
  0x2d   :  { %v294_v24 = vld [vmem:[%s1176_s3 + $0x48] sm:$0xff]  ;;  %v325_v25 = vld [vmem:[%s1176_s3 + $0x140] sm:$0xff]  ;;  %v694_v26 = vpack.c.bf16 %v342_v19, %v341_v18  ;;  %v343_v30 = vld [vmem:[%s1176_s3 + $0x1d0] sm:$0xff]  ;;  %v666_v34 = vpack.c.bf16 %v312_v29, %v311_v28 }
  0x2e   :  { %657 = vmatpush3.bf16.msra.mxu0 %v656_v8  ;;  %v326_v27 = vld [vmem:[%s1176_s3 + $0x148] sm:$0xff]  ;;  %v344_v31 = vld [vmem:[%s1176_s3 + $0x1d8] sm:$0xff]  ;;  %v664_v32 = vpack.c.bf16 %v294_v24, %v293_v23  ;;  %v295_v35 = vld [vmem:[%s1176_s3 + $0x50] sm:$0xff]  ;;  %v258_v3 = vshrl.u32 %v257_v2, 7  ;;  %p719_p3 = por %p718_p2, %p717_p1 }
  0x2f   :  { %689 = vmatpush3.bf16.msra.mxu1 %v688_v9  ;;  %659 = vmatprep.subr.bf16.mxu0 %v658_v10  ;;  %v696_v33 = vpack.c.bf16 %v326_v27, %v325_v25  ;;  %v296_v36 = vld [vmem:[%s1176_s3 + $0x58] sm:$0xff]  ;;  %v327_v37 = vld [vmem:[%s1176_s3 + $0x150] sm:$0xff]  ;;  %v698_v38 = vpack.c.bf16 %v344_v31, %v343_v30  ;;  %v313_v40 = vld [vmem:[%s1176_s3 + $0xe0] sm:$0xff] }
  0x30   :  { %691 = vmatprep.subr.bf16.mxu1 %v690_v14  ;;  %v328_v39 = vld [vmem:[%s1176_s3 + $0x158] sm:$0xff]  ;;  %v314_v41 = vld [vmem:[%s1176_s3 + $0xe8] sm:$0xff]  ;;  %v345_v42 = vld [vmem:[%s1176_s3 + $0x1e0] sm:$0xff]  ;;  %v668_v44 = vpack.c.bf16 %v296_v36, %v295_v35  ;;  %v259_v4 = vsub.s32 0, %v258_v3  ;;  %v267_v6 = vsub.s32 2, %v258_v3  ;;  %v263_v7 = vsub.s32 1, %v258_v3  ;;  %p720_p4 = pnand %p719_p3, %p713_p0 }
  0x31   :  { %v346_v43 = vld [vmem:[%s1176_s3 + $0x1e8] sm:$0xff]  ;;  %v700_v45 = vpack.c.bf16 %v328_v39, %v327_v37  ;;  %v670_v46 = vpack.c.bf16 %v314_v41, %v313_v40  ;;  %v297_v48 = vld [vmem:[%s1176_s3 + $0x60] sm:$0xff]  ;;  %v315_v54 = vld [vmem:[%s1176_s3 + $0xf0] sm:$0xff]  ;;  %v271_v8 = vsub.s32 3, %v258_v3 }
  0x32   :  { %661 = vmatpush3.bf16.msra.mxu0 %v660_v20  ;;  %v702_v47 = vpack.c.bf16 %v346_v43, %v345_v42  ;;  %v298_v49 = vld [vmem:[%s1176_s3 + $0x68] sm:$0xff]  ;;  %v329_v50 = vld [vmem:[%s1176_s3 + $0x160] sm:$0xff]  ;;  %v316_v55 = vld [vmem:[%s1176_s3 + $0xf8] sm:$0xff] }
  0x33   :  { %693 = vmatpush3.bf16.msra.mxu1 %v692_v21  ;;  %663 = vmatprep.subr.bf16.mxu0 %v662_v22  ;;  %v672_v51 = vpack.c.bf16 %v298_v49, %v297_v48  ;;  %v330_v52 = vld [vmem:[%s1176_s3 + $0x168] sm:$0xff]  ;;  %v347_v56 = vld [vmem:[%s1176_s3 + $0x1f0] sm:$0xff]  ;;  %v674_v57 = vpack.c.bf16 %v316_v55, %v315_v54  ;;  %v348_v58 = vld [vmem:[%s1176_s3 + $0x1f8] sm:$0xff] }
  0x34   :  { %695 = vmatprep.subr.bf16.mxu1 %v694_v26  ;;  %v704_v53 = vpack.c.bf16 %v330_v52, %v329_v50  ;;  %v299_v59 = vld [vmem:[%s1176_s3 + $0x70] sm:$0xff]  ;;  %v300_v60 = vld [vmem:[%s1176_s3 + $0x78] sm:$0xff]  ;;  %v706_v61 = vpack.c.bf16 %v348_v58, %v347_v56  ;;  %v255_v5 = vld [vmem:[%s1175_s2] sm:$0xf] }
  0x35   :  { %v676_v62 = vpack.c.bf16 %v300_v60, %v299_v59  ;;  %v331_v63 = vld [vmem:[%s1176_s3 + $0x170] sm:$0xff]  ;;  %v332_v0 = vld [vmem:[%s1176_s3 + $0x178] sm:$0xff]  ;;  %v260_v9 = vrot.slane %v255_v5, %v259_v4  ;;  %v268_v10 = vrot.slane %v255_v5, %v267_v6  ;;  %v264_v11 = vrot.slane %v255_v5, %v263_v7  ;;  %v511_v27 = vld [vmem:[%s1177_s4] ss:$0 sm:$0xff] }
  0x36   :  { %665 = vmatpush3.bf16.msra.mxu0 %v664_v32  ;;  %v708_v1 = vpack.c.bf16 %v332_v0, %v331_v63  ;;  %v272_v12 = vrot.slane %v255_v5, %v271_v8 }
  0x37   :  { %697 = vmatpush3.bf16.msra.mxu1 %v696_v33  ;;  %667 = vmatprep.subr.bf16.mxu0 %v666_v34 }
  0x38   :  { %699 = vmatprep.subr.bf16.mxu1 %v698_v38 }
  0x3a   :  { %669 = vmatpush3.bf16.msra.mxu0 %v668_v44 }
  0x3b   :  { %701 = vmatpush3.bf16.msra.mxu1 %v700_v45  ;;  %671 = vmatprep.subr.bf16.mxu0 %v670_v46 }
  0x3c   :  { %703 = vmatprep.subr.bf16.mxu1 %v702_v47 }
  0x3e   :  { %673 = vmatpush3.bf16.msra.mxu0 %v672_v51 }
  0x3f   :  { %705 = vmatpush3.bf16.msra.mxu1 %v704_v53  ;;  %675 = vmatprep.subr.bf16.mxu0 %v674_v57 }
  0x40   :  { %707 = vmatprep.subr.bf16.mxu1 %v706_v61 }
  0x42   :  { %677 = vmatpush3.bf16.msra.mxu0 %v676_v62 }
  0x43   :  { %709 = vmatpush3.bf16.msra.mxu1 %v708_v1 }
  0xf8   :  { %v164_v13 = vpop.f32.mrb[0].mxu0 }
  0xf9   :  { %v277_v14 = vadd.f32 %v260_v9, %v164_v13  ;;  %v235_v15 = vpop.f32.mrb[0].mxu1  ;;  %v166_v16 = vpop.f32.mrb[1].mxu0 }
  0xfa   :  { %v279_v17 = vadd.f32 %v268_v10, %v235_v15  ;;  %v278_v18 = vadd.f32 %v264_v11, %v166_v16  ;;  %v237_v19 = vpop.f32.mrb[1].mxu1 }
  0xfb   :  { %v280_v20 = vadd.f32 %v272_v12, %v237_v19  ;;  %v281_v23 = vmax.f32 %v277_v14, 0.0 }
  0xfc   :  { %v283_v21 = vmax.f32 %v279_v17, 0.0  ;;  %v282_v22 = vmax.f32 %v278_v18, 0.0 }
  0xfd   :  { %v284_v24 = vmax.f32 %v280_v20, 0.0 }
  0xfe   :  { %420 = vmatprep.mubr.f32.mxu0 %v282_v22 }
  0xff   :  { %490 = vmatprep.mubr.f32.mxu1 %v284_v24  ;;  %421 = vmatmul.mubr.f32.vlgmr.msra.gmra.mrb[2].mxu0 %v281_v23 }
 0x100   :  { %491 = vmatmul.mubr.f32.vlgmr.msra.gmra.mrb[2].mxu1 %v283_v21 }
 0x1d2   :  { %v544_v25 = vpop.f32.mrb[2].mxu0 }
 0x1d3   :  { %v579_v26 = vpop.f32.mrb[2].mxu1  ;;  %v545_v28 = vpop.f32.mrb[3].mxu0 }
 0x1d4   :  { %v546_v29 = vadd.f32 %v545_v28, %v544_v25  ;;  %v580_v30 = vpop.f32.mrb[3].mxu1 }
 0x1d5   :  { %v581_v31 = vadd.f32 %v580_v30, %v579_v26 }
 0x1d6   :  { %v423_v32 = vadd.f32 %v546_v29, %v511_v27 }
 0x1d8   :  { %v493_v33 = vadd.f32 %v581_v31, %v423_v32 }
 0x1da   :  { %496 = vst [vmem:[#allocation3] sm:$0xff] %v493_v33 }
 0x1db   :  { %723 = shalt.err (!%p720_p4)
}
 0x1dc   :  { %s724_s4 = scalar_lea.hbm %s1178_s5, 128 }
 0x1dd   :  { %p725_p5 = scmp.ne.s32.totalorder %s1178_s5, %s724_s4  ;;  %p728_p6 = scmp.lt.u32.totalorder %s724_s4, %s1178_s5 }
 0x1df   :  { %p730_p7 = pnand %p728_p6, %p725_p5 }
 0x1e1   :  { %733 = shalt.err (!%p730_p7)
}
 0x1e2   :  { %506 = dma.vmem_to_hbm [thread:$0]  %s504_s20, 128, %s1178_s5, [#allocation4]  }
 0x1e3   :  { %734 = dma.done.wait [#allocation4], 128  }
 0x1e4   :  { %735 = vsyncadd [#allocation4], 4294967168 }
 0x1e5   :  { %510 = vsyncpa [#allocation4], 1 }

</bundles_post_ra>
